<compile_context>
chip_gen: v6e
topology: v6e:2x2x1
jax: 0.10.0
libtpu: 0.0.40
codegen_flags: <defaults>
</compile_context>

<pallas_src>
import jax
import jax.numpy as jnp
from jax.experimental import pallas as pl
from jax.experimental.pallas import tpu as pltpu


# ------------------------------ small helpers --------------------------------
def _round_up(x, m):
    return ((x + m - 1) // m) * m


_POW2_TILES = (2048, 1024, 512, 256, 128)  # power-of-two multiples of 128


def _vmem_limit_bytes():
    """Per-generation scoped-VMEM limit: ~112 MiB on 128-MiB chips (v5e/v6e),
    ~48 MiB on 64-MiB chips (v7x)."""
    try:
        phys = int(pltpu.get_tpu_info().vmem_capacity_bytes)
    except Exception:
        phys = 64 * 1024 * 1024
    return max(32 * 1024 * 1024, min(phys - 16 * 1024 * 1024, 112 * 1024 * 1024))


def _estimate_vmem(tm, tk, n_p, f_in_p, f_out_p, x_resident, proj_first):
    """Double-buffered working-set estimate (bytes) for the fused kernel."""
    bf2, f4 = 2, 4
    a_b = 2 * tm * tk * bf2
    x_b = 2 * (n_p if x_resident else tk) * f_in_p * bf2
    w_b = 2 * f_in_p * f_out_p * bf2
    b_b = 2 * f_out_p * f4
    o_b = 2 * tm * f_out_p * f4
    acc_b = tm * (f_out_p if proj_first else f_in_p) * f4
    return a_b + x_b + w_b + b_b + o_b + acc_b


def _plan(n, f_in, f_out, tm_pref=None, tk_pref=None):
    limit = _vmem_limit_bytes()
    big_vmem = limit >= (96 << 20)
    f_in_p = _round_up(f_in, 128)
    f_out_p = _round_up(f_out, 128)
    n128 = _round_up(n, 128)

    if tm_pref is None:
        tm_pref = 2048 if big_vmem else 1024
    if tk_pref is None:
        tk_pref = 1024 if big_vmem else 512

    def clip(pref):
        cap = min(max(pref, 128), n128)
        return max(t for t in _POW2_TILES if t <= cap)

    tm, tk = clip(tm_pref), clip(tk_pref)

    # Keep >= 2 row tiles so the "parallel" axis shards across both v7x TCs.
    while n128 >= 256 and tm > 128 and _round_up(n, max(tm, tk)) // tm < 2:
        tm //= 2

    n_p = _round_up(n, max(tm, tk))
    proj_first = f_out_p < f_in_p  # put the smaller feature dim on the O(N^2) matmul
    x_resident = (2 * n_p * f_in_p * 2) <= (limit // 3)

    # Shrink tiles (not spill) until the double-buffered working set fits.
    while _estimate_vmem(tm, tk, n_p, f_in_p, f_out_p, x_resident,
                         proj_first) > int(0.9 * limit):
        if x_resident and (2 * n_p * f_in_p * 2) > (limit // 4):
            x_resident = False
        elif tk > 128:
            tk //= 2
        elif tm > 128:
            tm //= 2
        else:
            break
        n_p = _round_up(n, max(tm, tk))

    return dict(n_p=n_p, f_in_p=f_in_p, f_out_p=f_out_p, tm=tm, tk=tk,
                x_resident=x_resident, proj_first=proj_first, vmem_limit=limit)


def _prep(arr, rows, cols, dtype):
    """Pad to (rows, cols) and cast — a no-op when done upstream (e.g. A built
    directly in bf16 at the padded size)."""
    r, c = arr.shape
    if (r, c) != (rows, cols):
        arr = jnp.pad(arr, ((0, rows - r), (0, cols - c)))
    if arr.dtype != dtype:
        arr = arr.astype(dtype)
    return arr


# ------------------------------ Pallas kernels --------------------------------
def _ax_first_kernel(tk, x_resident):
    """acc += A_ik @ X_k over k;  finalize: relu(bf16(acc) @ W + b)."""
    def kernel(a_ref, x_ref, w_ref, b_ref, o_ref, acc_ref):
        k = pl.program_id(1)

        @pl.when(k == 0)
        def _():
            acc_ref[...] = jnp.zeros_like(acc_ref)

        if x_resident:
            start = pl.multiple_of(k * tk, tk)
            x_blk = x_ref[pl.ds(start, tk), :]
        else:
            x_blk = x_ref[...]

        # bf16 x bf16 -> f32 accumulate on the MXU (dominant N^2 term).
        acc_ref[...] += jnp.dot(a_ref[...], x_blk,
                                preferred_element_type=jnp.float32)

        @pl.when(k == pl.num_programs(1) - 1)
        def _():
            # Downcast the f32 accumulator to bf16 instead of upcasting W:
            # keeps the finalize matmul on the fast bf16 MXU path.
            out = jnp.dot(acc_ref[...].astype(jnp.bfloat16), w_ref[...],
                          preferred_element_type=jnp.float32) + b_ref[...]
            o_ref[...] = jnp.maximum(out, 0.0).astype(o_ref.dtype)

    return kernel


def _proj_first_kernel(tk, x_resident):
    """Fused projection + aggregation: acc += A_ik @ (X_k @ W); finalize relu(acc+b).
    The small X_k @ W recompute (~F_in/tm of the work) replaces the H HBM round-trip."""
    def kernel(a_ref, x_ref, w_ref, b_ref, o_ref, acc_ref):
        k = pl.program_id(1)

        @pl.when(k == 0)
        def _():
            acc_ref[...] = jnp.zeros_like(acc_ref)

        if x_resident:
            start = pl.multiple_of(k * tk, tk)
            x_blk = x_ref[pl.ds(start, tk), :]
        else:
            x_blk = x_ref[...]

        h_blk = jnp.dot(x_blk, w_ref[...],
                        preferred_element_type=jnp.float32).astype(jnp.bfloat16)
        acc_ref[...] += jnp.dot(a_ref[...], h_blk,
                                preferred_element_type=jnp.float32)

        @pl.when(k == pl.num_programs(1) - 1)
        def _():
            o_ref[...] = jnp.maximum(acc_ref[...] + b_ref[...],
                                     0.0).astype(o_ref.dtype)

    return kernel


# ------------------------------ pallas_call wrapper ----------------------------
def _run_fused(a_p, x_p, w_p, b_p, plan, out_dtype):
    n_p, f_in_p, f_out_p = plan["n_p"], plan["f_in_p"], plan["f_out_p"]
    tm, tk = plan["tm"], plan["tk"]
    x_res, proj_first = plan["x_resident"], plan["proj_first"]

    kernel = (_proj_first_kernel if proj_first else _ax_first_kernel)(tk, x_res)
    acc_cols = f_out_p if proj_first else f_in_p

    if x_res:
        # Grid-invariant resident X: DMA'd once, sliced in-kernel -> no per-row-tile
        # re-read of X from HBM.
        x_spec = pl.BlockSpec((n_p, f_in_p), lambda i, k: (0, 0))
    else:
        x_spec = pl.BlockSpec((tk, f_in_p), lambda i, k: (k, 0))

    return pl.pallas_call(
        kernel,
        out_shape=jax.ShapeDtypeStruct((n_p, f_out_p), out_dtype),
        grid_spec=pltpu.PrefetchScalarGridSpec(
            num_scalar_prefetch=0,
            grid=(n_p // tm, n_p // tk),
            in_specs=[
                # A tile. (pipeline_mode=pl.Buffered(3) here only if profiling
                # shows exposed DMA on the A stream.)
                pl.BlockSpec((tm, tk), lambda i, k: (i, k)),
                x_spec,                                                # X
                pl.BlockSpec((f_in_p, f_out_p), lambda i, k: (0, 0)),  # W (resident)
                pl.BlockSpec((1, f_out_p), lambda i, k: (0, 0)),       # bias (resident)
            ],
            out_specs=pl.BlockSpec((tm, f_out_p), lambda i, k: (i, 0)),
            scratch_shapes=[pltpu.VMEM((tm, acc_cols), jnp.float32)],
        ),
        compiler_params=pltpu.CompilerParams(
            dimension_semantics=("parallel", "arbitrary"),
            vmem_limit_bytes=plan["vmem_limit"],
        ),
    )(a_p, x_p, w_p, b_p)


def gcn_layer(a_norm, x, w, b, *, tm=None, tk=None, out_dtype=jnp.float32):
    """Fused GCN layer: relu(a_norm @ x @ w + b).

    a_norm may be pre-padded to (n_p, n_p) bf16 (see normalized_adjacency) to avoid
    a padded f32 -> bf16 copy of the N^2 matrix; otherwise it is padded/cast here.
    Pass out_dtype=jnp.bfloat16 to halve output writeback if the consumer allows it.
    """
    n, f_in = x.shape
    f_out = w.shape[1]
    plan = _plan(n, f_in, f_out, tm, tk)

    a_p = _prep(a_norm, plan["n_p"], plan["n_p"], jnp.bfloat16)
    x_p = _prep(x, plan["n_p"], plan["f_in_p"], jnp.bfloat16)
    w_p = _prep(w, plan["f_in_p"], plan["f_out_p"], jnp.bfloat16)
    b_p = _prep(b.reshape(1, -1).astype(jnp.float32), 1, plan["f_out_p"], jnp.float32)

    out_p = _run_fused(a_p, x_p, w_p, b_p, plan, out_dtype)
    return out_p[:n, :f_out]


# ------------------------- graph preprocessing (glue) -------------------------
def normalized_adjacency(edge_list, num_nodes, pad_to=None, dtype=jnp.bfloat16):
    """D^{-1/2} (A + I) D^{-1/2}, built directly at the padded size in `dtype`
    (no padded f32 N^2 matrix is ever materialized).  Host-side glue, not a kernel."""
    if pad_to is None:
        pad_to = num_nodes
    pairs = set()
    for (u, v) in edge_list:                       # undirected, dedup host-side
        pairs.add((int(u), int(v)))
        pairs.add((int(v), int(u)))
    for i in range(num_nodes):                     # self loops
        pairs.add((i, i))
    src = jnp.array([p[0] for p in pairs], jnp.int32)
    dst = jnp.array([p[1] for p in pairs], jnp.int32)
    deg = jnp.zeros((num_nodes,), jnp.float32).at[src].add(1.0)
    d_inv_sqrt = jnp.where(deg > 0, 1.0 / jnp.sqrt(deg), 0.0)
    vals = (d_inv_sqrt[src] * d_inv_sqrt[dst]).astype(dtype)
    return jnp.zeros((pad_to, pad_to), dtype).at[src, dst].set(vals)


def reference(a_padded, x, w, b, n):
    """Pure-JAX reference with the same bf16 input rounding (f32 accumulation)."""
    a32 = a_padded[:n, :n].astype(jnp.float32)
    x32 = x.astype(jnp.bfloat16).astype(jnp.float32)
    w32 = w.astype(jnp.bfloat16).astype(jnp.float32)
    return jnp.maximum(a32 @ x32 @ w32 + b[None, :], 0.0)


# ---------------------------------- main --------------------------------------
if __name__ == "__main__":
    key = jax.random.PRNGKey(0)

    # (num_nodes, in_dim, out_dim):
    #   first config exercises the (A@X)@W path,
    #   second (F_in pads to 256 > F_out pads to 128) exercises the fused
    #   projection-first path.
    configs = [(8, 16, 32), (12, 200, 32)]

    for (n_nodes, in_dim, out_dim) in configs:
        key, kx, kw = jax.random.split(key, 3)
        X = jax.random.normal(kx, (n_nodes, in_dim), dtype=jnp.float32)
        W = jax.random.normal(kw, (in_dim, out_dim), dtype=jnp.float32)
        B = jnp.zeros((out_dim,), dtype=jnp.float32)

        edge_list = [(i, (i + 1) % n_nodes) for i in range(n_nodes)]
        edge_list.append((0, n_nodes // 2))

        # Build A directly in bf16 at the kernel's padded node count.
        plan = _plan(n_nodes, in_dim, out_dim)
        A_norm = normalized_adjacency(edge_list, n_nodes, pad_to=plan["n_p"])

        out = jax.block_until_ready(gcn_layer(A_norm, X, W, B))
        ref = reference(A_norm, X, W, B, n_nodes)

        assert out.shape == (n_nodes, out_dim)
        rel_err = float(jnp.max(jnp.abs(out - ref)) /
                        (jnp.max(jnp.abs(ref)) + 1e-6))
        assert rel_err < 2e-2, f"config {(n_nodes, in_dim, out_dim)}: rel err {rel_err}"

    print("KERNEL_OK")
</pallas_src>

<mosaic_0001>
module attributes {stable_mosaic.version = 11 : i64} {
  func.func @kernel(%arg0: i32, %arg1: i32, %arg2: memref<128x128xbf16, #tpu.memory_space<vmem>>, %arg3: memref<128x128xbf16, #tpu.memory_space<vmem>>, %arg4: memref<128x128xbf16, #tpu.memory_space<vmem>>, %arg5: memref<1x128xf32, #tpu.memory_space<vmem>>, %arg6: memref<128x128xf32, #tpu.memory_space<vmem>>, %arg7: memref<128x128xf32, #tpu.memory_space<vmem>>) attributes {dimension_semantics = [#tpu.dimension_semantics<parallel>, #tpu.dimension_semantics<arbitrary>], iteration_bounds = array<i64: 1, 1>, scalar_prefetch = 0 : i64, scratch_operands = 1 : i64, tpu.core_type = #tpu.core_type<tc>, window_params = [{transform_indices = @transform_0, window_bounds = array<i64: 128, 128>}, {pipeline_mode = #tpu.pipeline_mode<synchronous>, transform_indices = @transform_1, window_bounds = array<i64: 128, 128>}, {pipeline_mode = #tpu.pipeline_mode<synchronous>, transform_indices = @transform_2, window_bounds = array<i64: 128, 128>}, {pipeline_mode = #tpu.pipeline_mode<synchronous>, transform_indices = @transform_3, window_bounds = array<i64: 1, 128>}, {transform_indices = @transform_4, window_bounds = array<i64: 128, 128>}]} {
    %c0_i32 = arith.constant 0 : i32
    %0 = arith.cmpi eq, %arg1, %c0_i32 : i32
    %1 = arith.extui %0 : i1 to i32
    %c0_i32_0 = arith.constant 0 : i32
    %2 = arith.cmpi ne, %1, %c0_i32_0 : i32
    scf.if %2 {
      %cst_9 = arith.constant 0.000000e+00 : f32
      %15 = vector.broadcast %cst_9 : f32 to vector<128x128xf32>
      %c0_10 = arith.constant 0 : index
      %c0_11 = arith.constant 0 : index
      %16 = vector.load %arg7[%c0_10, %c0_11] : memref<128x128xf32, #tpu.memory_space<vmem>>, vector<128x128xf32>
      tpu.vector_store %arg7[%c0_10, %c0_11], %15 {strides = array<i32>} : memref<128x128xf32, #tpu.memory_space<vmem>>, vector<128x128xf32>,
    } else {
    }
    %c128_i32 = arith.constant 128 : i32
    %3 = arith.muli %arg1, %c128_i32 : i32
    %4 = tpu.assume_multiple %3, 128 : i32
    %5 = arith.index_cast %4 : i32 to index
    %c0 = arith.constant 0 : index
    %6 = vector.load %arg3[%5, %c0] : memref<128x128xbf16, #tpu.memory_space<vmem>>, vector<128x128xbf16>
    %c0_1 = arith.constant 0 : index
    %c0_2 = arith.constant 0 : index
    %7 = vector.load %arg7[%c0_1, %c0_2] : memref<128x128xf32, #tpu.memory_space<vmem>>, vector<128x128xf32>
    %c0_3 = arith.constant 0 : index
    %c0_4 = arith.constant 0 : index
    %8 = vector.load %arg2[%c0_3, %c0_4] : memref<128x128xbf16, #tpu.memory_space<vmem>>, vector<128x128xbf16>
    %cst = arith.constant dense<0.000000e+00> : vector<128x128xf32>
    %9 = tpu.matmul %8, %6, %cst {dimension_numbers = #tpu.dot_dimension_numbers<[1], [0], [0], [1], [0, 0, 1, 1], [], []>} : vector<128x128xbf16>, vector<128x128xbf16>, vector<128x128xf32> -> vector<128x128xf32>
    %10 = arith.addf %7, %9 : vector<128x128xf32>
    %c0_5 = arith.constant 0 : index
    %c0_6 = arith.constant 0 : index
    %11 = vector.load %arg7[%c0_5, %c0_6] : memref<128x128xf32, #tpu.memory_space<vmem>>, vector<128x128xf32>
    tpu.vector_store %arg7[%c0_5, %c0_6], %10 {strides = array<i32>} : memref<128x128xf32, #tpu.memory_space<vmem>>, vector<128x128xf32>,
    %c0_i32_7 = arith.constant 0 : i32
    %12 = arith.cmpi eq, %arg1, %c0_i32_7 : i32
    %13 = arith.extui %12 : i1 to i32
    %c0_i32_8 = arith.constant 0 : i32
    %14 = arith.cmpi ne, %13, %c0_i32_8 : i32
    scf.if %14 {
      %c0_9 = arith.constant 0 : index
      %c0_10 = arith.constant 0 : index
      %15 = vector.load %arg7[%c0_9, %c0_10] : memref<128x128xf32, #tpu.memory_space<vmem>>, vector<128x128xf32>
      %16 = arith.truncf %15 : vector<128x128xf32> to vector<128x128xbf16>
      %c0_11 = arith.constant 0 : index
      %c0_12 = arith.constant 0 : index
      %17 = vector.load %arg4[%c0_11, %c0_12] : memref<128x128xbf16, #tpu.memory_space<vmem>>, vector<128x128xbf16>
      %cst_13 = arith.constant dense<0.000000e+00> : vector<128x128xf32>
      %18 = tpu.matmul %16, %17, %cst_13 {dimension_numbers = #tpu.dot_dimension_numbers<[1], [0], [0], [1], [0, 0, 1, 1], [], []>} : vector<128x128xbf16>, vector<128x128xbf16>, vector<128x128xf32> -> vector<128x128xf32>
      %c0_14 = arith.constant 0 : index
      %c0_15 = arith.constant 0 : index
      %19 = vector.load %arg5[%c0_14, %c0_15] : memref<1x128xf32, #tpu.memory_space<vmem>>, vector<1x128xf32>
      %20 = vector.broadcast %19 : vector<1x128xf32> to vector<128x128xf32>
      %21 = arith.addf %18, %20 : vector<128x128xf32>
      %cst_16 = arith.constant 0.000000e+00 : f32
      %22 = vector.broadcast %cst_16 : f32 to vector<128x128xf32>
      %23 = arith.maximumf %21, %22 : vector<128x128xf32>
      %c0_17 = arith.constant 0 : index
      %c0_18 = arith.constant 0 : index
      %24 = vector.load %arg6[%c0_17, %c0_18] : memref<128x128xf32, #tpu.memory_space<vmem>>, vector<128x128xf32>
      tpu.vector_store %arg6[%c0_17, %c0_18], %23 {strides = array<i32>} : memref<128x128xf32, #tpu.memory_space<vmem>>, vector<128x128xf32>,
    } else {
    }
    return
  }
  func.func @transform_0(%arg0: i32, %arg1: i32) -> (i32, i32) {
    %c0_i32 = arith.constant 0 : i32
    return %arg0, %arg1 : i32, i32
  }
  func.func @transform_1(%arg0: i32, %arg1: i32) -> (i32, i32) {
    %c0_i32 = arith.constant 0 : i32
    %c0_i32_0 = arith.constant 0 : i32
    %c0_i32_1 = arith.constant 0 : i32
    return %c0_i32, %c0_i32_0 : i32, i32
  }
  func.func @transform_2(%arg0: i32, %arg1: i32) -> (i32, i32) {
    %c0_i32 = arith.constant 0 : i32
    %c0_i32_0 = arith.constant 0 : i32
    %c0_i32_1 = arith.constant 0 : i32
    return %c0_i32, %c0_i32_0 : i32, i32
  }
  func.func @transform_3(%arg0: i32, %arg1: i32) -> (i32, i32) {
    %c0_i32 = arith.constant 0 : i32
    %c0_i32_0 = arith.constant 0 : i32
    %c0_i32_1 = arith.constant 0 : i32
    return %c0_i32, %c0_i32_0 : i32, i32
  }
  func.func @transform_4(%arg0: i32, %arg1: i32) -> (i32, i32) {
    %c0_i32 = arith.constant 0 : i32
    %c0_i32_0 = arith.constant 0 : i32
    return %arg0, %c0_i32 : i32, i32
  }
}

</mosaic_0001>

<bundles_post_ra>
// kernel: tpu_custom_call.1
= control target key start
LH: loop header
LB: loop body
LE: loop exit
PB: predicated region body
PF: predicated region fallthrough
CT: control target
= control target key end

     0   :  { %9 = vsyncpa [#allocation4], 0  ;;  %s910_s0 = inlined_call_operand.hbm [shape: bf16[128,128], index: 0, kind: input, shape index: {}]   ;;  %s911_s1 = inlined_call_operand.hbm [shape: bf16[128,128], index: 1, kind: input, shape index: {}]   ;;  %s912_s2 = inlined_call_operand.hbm [shape: bf16[128,128], index: 2, kind: input, shape index: {}]   ;;  %s913_s3 = inlined_call_operand.vmem [shape: f32[1,128], index: 3, kind: input, shape index: {}]   ;;  %s914_s4 = inlined_call_operand.hbm [shape: f32[128,128], index: 4, kind: output, shape index: {}]  }
   0x1   :  { %10 = vsyncpa [#allocation7], 0 }
   0x2   :  { %11 = vsyncpa [#allocation5], 0  ;;  %s844_s15 = smov [#allocation6]   ;;  %s845_s17 = smov [#allocation3]  }
   0x3   :  { %s29_s16 = sshll.u32 %s844_s15, 4  ;;  %s17_s18 = sshll.u32 %s845_s17, 4  ;;  %s30_s16 = int_to_ptr.vmem [resolvable:$true] %s29_s16  ;;  %s18_s18 = int_to_ptr.vmem [resolvable:$true] %s17_s18 }
   0x4   :  { %s766_s19 = scalar_lea.vmem %s30_s16, 1024  ;;  %p771_p1 = scmp.lt.s32.totalorder %s30_s16, %s30_s16 }
   0x5   :  { %p767_p0 = scmp.ne.s32.totalorder %s30_s16, %s766_s19  ;;  %p772_p2 = scmp.lt.s32.totalorder %s766_s19, %s766_s19 }
   0x7   :  { %p773_p3 = por %p772_p2, %p771_p1 }
   0x9   :  { %p774_p4 = pnand %p773_p3, %p767_p0 }
   0xb   :  { %777 = shalt.err (!%p774_p4)
}
   0xc   :  { %s846_s20 = smov 64   ;;  %s847_s21 = smov 4  }
   0xd   :  { %35 = dma.hbm_to_vmem [thread:$0]  %s911_s1, 1024, %s30_s16, [#allocation7], %s846_s20, %s846_s20, %s847_s21  }
   0xe   :  { %s786_s24 = scalar_lea.vmem %s18_s18, 1024  ;;  %p791_p6 = scmp.lt.s32.totalorder %s18_s18, %s18_s18 }
   0xf   :  { %p787_p5 = scmp.ne.s32.totalorder %s18_s18, %s786_s24  ;;  %p792_p7 = scmp.lt.s32.totalorder %s786_s24, %s786_s24 }
  0x11   :  { %p793_p8 = por %p792_p7, %p791_p6 }
  0x13   :  { %p794_p9 = pnand %p793_p8, %p787_p5 }
  0x15   :  { %797 = shalt.err (!%p794_p9)
}
  0x16   :  { %23 = dma.hbm_to_vmem [thread:$0]  %s910_s0, 1024, %s18_s18, [#allocation4], %s846_s20, %s846_s20, %s847_s21  }
  0x17   :  { %s848_s27 = smov [#allocation8]  }
  0x18   :  { %s41_s28 = sshll.u32 %s848_s27, 4  ;;  %s42_s28 = int_to_ptr.vmem [resolvable:$true] %s41_s28 }
  0x19   :  { %s806_s29 = scalar_lea.vmem %s42_s28, 1024  ;;  %p811_p11 = scmp.lt.s32.totalorder %s42_s28, %s42_s28 }
  0x1a   :  { %p807_p10 = scmp.ne.s32.totalorder %s42_s28, %s806_s29  ;;  %p812_p12 = scmp.lt.s32.totalorder %s806_s29, %s806_s29 }
  0x1c   :  { %p813_p13 = por %p812_p12, %p811_p11 }
  0x1e   :  { %p814_p0 = pnand %p813_p13, %p807_p10 }
  0x20   :  { %817 = shalt.err (!%p814_p0)
}
  0x21   :  { %47 = dma.hbm_to_vmem [thread:$0]  %s912_s2, 1024, %s42_s28, [#allocation7], %s846_s20, %s846_s20, %s847_s21  }
  0x22   :  { %838 = dma.done.wait [#allocation4], 1024  }
  0x23   :  { %839 = vsyncadd [#allocation4], 4294966272 }
  0x24   :  { %840 = dma.done.wait [#allocation7], 2048  }
  0x25   :  { %841 = vsyncadd [#allocation7], 4294965248  ;;  %v734_v0 = vld [vmem:[#allocation6 + $0x38] sm:$0xff]   ;;  %v735_v1 = vld [vmem:[#allocation6 + $0x30] sm:$0xff]  }
  0x26   :  { %662 = vmatprep.subr.bf16.mxu0 %v734_v0  ;;  %v736_v2 = vld [vmem:[#allocation6 + $0x28] sm:$0xff]   ;;  %v737_v3 = vld [vmem:[#allocation6 + $0x20] sm:$0xff]   ;;  %v738_v5 = vld [vmem:[#allocation6 + $0x18] sm:$0xff]  }
  0x27   :  { %663 = vmatpush3.bf16.msra.mxu0 %v734_v0  ;;  %v742_v4 = vld [vmem:[#allocation3] sm:$0xff]   ;;  %v739_v6 = vld [vmem:[#allocation6 + $0x10] sm:$0xff]   ;;  %v750_v7 = vld [vmem:[#allocation8 + $0x38] sm:$0xff]  }
  0x28   :  { %664 = vmatprep.subr.bf16.mxu0 %v735_v1  ;;  %678 = vmatprep.mubr.bf16.mxu0 %v742_v4  ;;  %v751_v8 = vld [vmem:[#allocation8 + $0x30] sm:$0xff]   ;;  %v740_v9 = vld [vmem:[#allocation6 + $0x8] sm:$0xff]   ;;  %v741_v11 = vld [vmem:[#allocation6] sm:$0xff]  }
  0x29   :  { %694 = vmatprep.subr.bf16.mxu1 %v750_v7  ;;  %v752_v10 = vld [vmem:[#allocation8 + $0x28] sm:$0xff]   ;;  %v753_v12 = vld [vmem:[#allocation8 + $0x20] sm:$0xff]   ;;  %v754_v13 = vld [vmem:[#allocation8 + $0x18] sm:$0xff]  }
  0x2a   :  { %695 = vmatpush3.bf16.msra.mxu1 %v750_v7  ;;  %v743_v14 = vld [vmem:[#allocation3 + $0x8] sm:$0xff]   ;;  %v744_v15 = vld [vmem:[#allocation3 + $0x10] sm:$0xff]   ;;  %v745_v17 = vld [vmem:[#allocation3 + $0x18] sm:$0xff]  }
  0x2b   :  { %665 = vmatpush3.bf16.msra.mxu0 %v735_v1  ;;  %696 = vmatprep.subr.bf16.mxu1 %v751_v8  ;;  %v755_v16 = vld [vmem:[#allocation8 + $0x10] sm:$0xff]   ;;  %v746_v18 = vld [vmem:[#allocation3 + $0x20] sm:$0xff]   ;;  %v747_v19 = vld [vmem:[#allocation3 + $0x28] sm:$0xff]  }
  0x2c   :  { %666 = vmatprep.subr.bf16.mxu0 %v736_v2  ;;  %v748_v20 = vld [vmem:[#allocation3 + $0x30] sm:$0xff]   ;;  %v749_v21 = vld [vmem:[#allocation3 + $0x38] sm:$0xff]   ;;  %v756_v22 = vld [vmem:[#allocation8 + $0x8] sm:$0xff]  }
  0x2d   :  { %v757_v23 = vld [vmem:[#allocation8] sm:$0xff]  }
  0x2e   :  { %697 = vmatpush3.bf16.msra.mxu1 %v751_v8  ;;  %v889_v48 = vld [vmem:[%s913_s3] ss:$0 sm:$0xff]  ;;  %s849_s3 = smov [#allocation9]  }
  0x2f   :  { %667 = vmatpush3.bf16.msra.mxu0 %v736_v2  ;;  %698 = vmatprep.subr.bf16.mxu1 %v752_v10  ;;  %s590_s5 = sshll.u32 %s849_s3, 4  ;;  %s591_s5 = int_to_ptr.vmem [resolvable:$true] %s590_s5 }
  0x30   :  { %668 = vmatprep.subr.bf16.mxu0 %v737_v3  ;;  %s818_s6 = scalar_lea.vmem %s591_s5, 2048  ;;  %p823_p2 = scmp.lt.s32.totalorder %s591_s5, %s591_s5 }
  0x31   :  { %p819_p1 = scmp.ne.s32.totalorder %s591_s5, %s818_s6  ;;  %p824_p3 = scmp.lt.s32.totalorder %s818_s6, %s818_s6 }
  0x32   :  { %699 = vmatpush3.bf16.msra.mxu1 %v752_v10 }
  0x33   :  { %669 = vmatpush3.bf16.msra.mxu0 %v737_v3  ;;  %700 = vmatprep.subr.bf16.mxu1 %v753_v12  ;;  %p825_p4 = por %p824_p3, %p823_p2 }
  0x34   :  { %670 = vmatprep.subr.bf16.mxu0 %v738_v5 }
  0x35   :  { %p826_p5 = pnand %p825_p4, %p819_p1 }
  0x36   :  { %701 = vmatpush3.bf16.msra.mxu1 %v753_v12 }
  0x37   :  { %671 = vmatpush3.bf16.msra.mxu0 %v738_v5  ;;  %702 = vmatprep.subr.bf16.mxu1 %v754_v13 }
  0x38   :  { %672 = vmatprep.subr.bf16.mxu0 %v739_v6 }
  0x3a   :  { %703 = vmatpush3.bf16.msra.mxu1 %v754_v13 }
  0x3b   :  { %673 = vmatpush3.bf16.msra.mxu0 %v739_v6  ;;  %704 = vmatprep.subr.bf16.mxu1 %v755_v16 }
  0x3c   :  { %674 = vmatprep.subr.bf16.mxu0 %v740_v9 }
  0x3e   :  { %705 = vmatpush3.bf16.msra.mxu1 %v755_v16 }
  0x3f   :  { %675 = vmatpush3.bf16.msra.mxu0 %v740_v9  ;;  %706 = vmatprep.subr.bf16.mxu1 %v756_v22 }
  0x40   :  { %676 = vmatprep.subr.bf16.mxu0 %v741_v11 }
  0x42   :  { %707 = vmatpush3.bf16.msra.mxu1 %v756_v22 }
  0x43   :  { %677 = vmatpush3.bf16.msra.mxu0 %v741_v11  ;;  %708 = vmatprep.subr.bf16.mxu1 %v757_v23 }
  0x46   :  { %679 = vmatmul.mubr.bf16.vlgmr.msra.gmra.mxu0 %v743_v14  ;;  %709 = vmatpush3.bf16.msra.mxu1 %v757_v23 }
  0x47   :  { %682 = vmatprep.mubr.bf16.mxu0 %v744_v15 }
  0x4e   :  { %683 = vmatmul.mubr.bf16.gmra.mxu0 %v745_v17 }
  0x4f   :  { %686 = vmatprep.mubr.bf16.mxu0 %v746_v18 }
  0x56   :  { %687 = vmatmul.mubr.bf16.gmra.mxu0 %v747_v19 }
  0x57   :  { %690 = vmatprep.mubr.bf16.mxu0 %v748_v20 }
  0x5e   :  { %691 = vmatmul.mubr.bf16.gmra.mxu0 %v749_v21 }
 0x106   :  { %v680_v24 = vpop.f32.mrf.mxu0 }
 0x108   :  { %v263_v25 = vpop.f32.mrf.mxu0 }
 0x10a   :  { %v681_v26 = vpop.f32.mrf.mxu0 }
 0x10b   :  { %v378_v29 = vpack.c.bf16 %v681_v26, %v680_v24 }
 0x10c   :  { %v266_v27 = vpop.f32.mrf.mxu0 }
 0x10d   :  { %v377_v28 = vpack.c.bf16 %v266_v27, %v263_v25 }
 0x10e   :  { %v684_v30 = vpop.f32.mrf.mxu0 }
 0x10f   :  { %710 = vmatprep.mubr.bf16.mxu1 %v377_v28 }
 0x110   :  { %v279_v31 = vpop.f32.mrf.mxu0  ;;  %711 = vmatmul.mubr.bf16.vlgmr.msra.gmra.mxu1 %v378_v29 }
 0x112   :  { %v685_v32 = vpop.f32.mrf.mxu0 }
 0x113   :  { %v380_v35 = vpack.c.bf16 %v685_v32, %v684_v30 }
 0x114   :  { %v282_v33 = vpop.f32.mrf.mxu0 }
 0x115   :  { %v379_v34 = vpack.c.bf16 %v282_v33, %v279_v31 }
 0x116   :  { %v688_v36 = vpop.f32.mrf.mxu0 }
 0x117   :  { %714 = vmatprep.mubr.bf16.mxu1 %v379_v34 }
 0x118   :  { %v295_v37 = vpop.f32.mrf.mxu0  ;;  %715 = vmatmul.mubr.bf16.gmra.mxu1 %v380_v35 }
 0x11a   :  { %v689_v38 = vpop.f32.mrf.mxu0 }
 0x11b   :  { %v382_v41 = vpack.c.bf16 %v689_v38, %v688_v36 }
 0x11c   :  { %v298_v39 = vpop.f32.mrf.mxu0 }
 0x11d   :  { %v381_v40 = vpack.c.bf16 %v298_v39, %v295_v37 }
 0x11e   :  { %v692_v42 = vpop.f32.mrf.mxu0 }
 0x11f   :  { %718 = vmatprep.mubr.bf16.mxu1 %v381_v40 }
 0x120   :  { %v311_v43 = vpop.f32.mrf.mxu0  ;;  %719 = vmatmul.mubr.bf16.gmra.mxu1 %v382_v41 }
 0x122   :  { %v693_v44 = vpop.f32.mrf.mxu0 }
 0x123   :  { %v384_v47 = vpack.c.bf16 %v693_v44, %v692_v42 }
 0x124   :  { %v314_v45 = vpop.f32.mrf.mxu0 }
 0x125   :  { %v383_v46 = vpack.c.bf16 %v314_v45, %v311_v43 }
 0x127   :  { %722 = vmatprep.mubr.bf16.mxu1 %v383_v46 }
 0x128   :  { %723 = vmatmul.mubr.bf16.gmra.mxu1 %v384_v47 }
 0x1d0   :  { %v712_v49 = vpop.f32.mrf.mxu1 }
 0x1d1   :  { %v499_v50 = vadd.f32 %v712_v49, %v889_v48 }
 0x1d2   :  { %v490_v51 = vpop.f32.mrf.mxu1 }
 0x1d3   :  { %v555_v52 = vmax.f32 %v499_v50, 0.0  ;;  %v491_v53 = vadd.f32 %v889_v48, %v490_v51 }
 0x1d4   :  { %v713_v54 = vpop.f32.mrf.mxu1 }
 0x1d5   :  { %571 = vst [vmem:[#allocation9 + $0x10] sm:$0xff] %v555_v52  ;;  %v553_v55 = vmax.f32 %v491_v53, 0.0  ;;  %v502_v56 = vadd.f32 %v713_v54, %v889_v48 }
 0x1d6   :  { %v493_v57 = vpop.f32.mrf.mxu1 }
 0x1d7   :  { %569 = vst [vmem:[#allocation9] sm:$0xff] %v553_v55  ;;  %v556_v58 = vmax.f32 %v502_v56, 0.0  ;;  %v494_v59 = vadd.f32 %v889_v48, %v493_v57 }
 0x1d8   :  { %v716_v60 = vpop.f32.mrf.mxu1 }
 0x1d9   :  { %572 = vst [vmem:[#allocation9 + $0x18] sm:$0xff] %v556_v58  ;;  %v554_v61 = vmax.f32 %v494_v59, 0.0  ;;  %v515_v62 = vadd.f32 %v716_v60, %v889_v48 }
 0x1da   :  { %v506_v63 = vpop.f32.mrf.mxu1 }
 0x1db   :  { %570 = vst [vmem:[#allocation9 + $0x8] sm:$0xff] %v554_v61  ;;  %v559_v0 = vmax.f32 %v515_v62, 0.0  ;;  %v507_v1 = vadd.f32 %v889_v48, %v506_v63 }
 0x1dc   :  { %v717_v2 = vpop.f32.mrf.mxu1 }
 0x1dd   :  { %575 = vst [vmem:[#allocation9 + $0x30] sm:$0xff] %v559_v0  ;;  %v557_v3 = vmax.f32 %v507_v1, 0.0  ;;  %v518_v4 = vadd.f32 %v717_v2, %v889_v48 }
 0x1de   :  { %v509_v5 = vpop.f32.mrf.mxu1 }
 0x1df   :  { %573 = vst [vmem:[#allocation9 + $0x20] sm:$0xff] %v557_v3  ;;  %v560_v6 = vmax.f32 %v518_v4, 0.0  ;;  %v510_v7 = vadd.f32 %v889_v48, %v509_v5 }
 0x1e0   :  { %v720_v8 = vpop.f32.mrf.mxu1 }
 0x1e1   :  { %576 = vst [vmem:[#allocation9 + $0x38] sm:$0xff] %v560_v6  ;;  %v558_v9 = vmax.f32 %v510_v7, 0.0  ;;  %v531_v10 = vadd.f32 %v720_v8, %v889_v48 }
 0x1e2   :  { %v522_v11 = vpop.f32.mrf.mxu1 }
 0x1e3   :  { %574 = vst [vmem:[#allocation9 + $0x28] sm:$0xff] %v558_v9  ;;  %v563_v12 = vmax.f32 %v531_v10, 0.0  ;;  %v523_v13 = vadd.f32 %v889_v48, %v522_v11 }
 0x1e4   :  { %v721_v14 = vpop.f32.mrf.mxu1 }
 0x1e5   :  { %579 = vst [vmem:[#allocation9 + $0x50] sm:$0xff] %v563_v12  ;;  %v561_v15 = vmax.f32 %v523_v13, 0.0  ;;  %v534_v16 = vadd.f32 %v721_v14, %v889_v48 }
 0x1e6   :  { %v525_v17 = vpop.f32.mrf.mxu1 }
 0x1e7   :  { %577 = vst [vmem:[#allocation9 + $0x40] sm:$0xff] %v561_v15  ;;  %v564_v18 = vmax.f32 %v534_v16, 0.0  ;;  %v526_v19 = vadd.f32 %v889_v48, %v525_v17 }
 0x1e8   :  { %v724_v20 = vpop.f32.mrf.mxu1 }
 0x1e9   :  { %580 = vst [vmem:[#allocation9 + $0x58] sm:$0xff] %v564_v18  ;;  %v562_v21 = vmax.f32 %v526_v19, 0.0  ;;  %v547_v22 = vadd.f32 %v724_v20, %v889_v48 }
 0x1ea   :  { %v538_v23 = vpop.f32.mrf.mxu1 }
 0x1eb   :  { %578 = vst [vmem:[#allocation9 + $0x48] sm:$0xff] %v562_v21  ;;  %v567_v24 = vmax.f32 %v547_v22, 0.0  ;;  %v539_v25 = vadd.f32 %v889_v48, %v538_v23 }
 0x1ec   :  { %v725_v26 = vpop.f32.mrf.mxu1 }
 0x1ed   :  { %583 = vst [vmem:[#allocation9 + $0x70] sm:$0xff] %v567_v24  ;;  %v565_v27 = vmax.f32 %v539_v25, 0.0  ;;  %v550_v28 = vadd.f32 %v725_v26, %v889_v48 }
 0x1ee   :  { %v541_v29 = vpop.f32.mrf.mxu1 }
 0x1ef   :  { %581 = vst [vmem:[#allocation9 + $0x60] sm:$0xff] %v565_v27  ;;  %v568_v30 = vmax.f32 %v550_v28, 0.0  ;;  %v542_v31 = vadd.f32 %v889_v48, %v541_v29 }
 0x1f1   :  { %584 = vst [vmem:[#allocation9 + $0x78] sm:$0xff] %v568_v30  ;;  %v566_v32 = vmax.f32 %v542_v31, 0.0 }
 0x1f3   :  { %582 = vst [vmem:[#allocation9 + $0x68] sm:$0xff] %v566_v32 }
 0x1f4   :  { %829 = shalt.err (!%p826_p5)
}
 0x1f5   :  { %s850_s7 = smov 128   ;;  %s851_s8 = smov 8  }
 0x1f6   :  { %596 = dma.vmem_to_hbm [thread:$0]  %s591_s5, 2048, %s914_s4, [#allocation5], %s850_s7, %s850_s7, %s851_s8  }
 0x1f7   :  { %842 = dma.done.wait [#allocation5], 2048  }
 0x1f8   :  { %843 = vsyncadd [#allocation5], 4294965248 }
 0x1f9   :  { %600 = vsyncpa [#allocation4], 1 }
 0x1fa   :  { %601 = vsyncpa [#allocation7], 1 }
 0x1fb   :  { %602 = vsyncpa [#allocation5], 1 }

</bundles_post_ra>
